<compile_context>
chip_gen: v6e
topology: v6e:2x2x1
jax: 0.10.0
libtpu: 0.0.40
codegen_flags: <defaults>
</compile_context>

<pallas_src>
import math
from functools import partial

import numpy as np
import jax
import jax.numpy as jnp
from jax import lax
from jax.experimental import pallas as pl
from jax.experimental.pallas import tpu as pltpu


def _as_pair(v):
    if isinstance(v, int):
        return (v, v)
    v = tuple(v)
    return (v[0], v[0]) if len(v) == 1 else (v[0], v[1])


def _vmem_capacity_bytes():
    """Per-TensorCore VMEM capacity; conservative (v7x, 64 MiB) fallback."""
    try:
        info = pltpu.get_tpu_info()
        for attr in ("vmem_capacity_bytes", "vmem_bytes", "vmem_size_bytes"):
            v = getattr(info, attr, None)
            if v:
                return int(v)
    except Exception:
        pass
    return 64 << 20


def _tile_bytes(shape, dtype):
    """VMEM footprint of a tile, dtype-aware: (8,128) f32, (16,128) bf16, (32,128) int8."""
    it = jnp.dtype(dtype).itemsize
    sub = 8 * max(1, 4 // it)
    s = list(shape)
    s[-1] = -(-s[-1] // 128) * 128
    if len(s) >= 2:
        s[-2] = -(-s[-2] // sub) * sub
    n = 1
    for d in s:
        n *= d
    return n * it


def _block_bytes(tc, H, W, Ho, Wo, Wp, dtype):
    """Double-buffered in/out blocks + row scratch + 1 MiB slack for one grid step."""
    return (2 * _tile_bytes((1, H, W, tc), dtype)
            + 2 * _tile_bytes((1, Ho, Wo, tc), dtype)
            + _tile_bytes((1, Wp, tc), dtype)
            + (1 << 20))


def _pick_channel_tile(N, C, H, W, Ho, Wo, Wp, dtype, vmem_cap):
    """Largest lane-legal channel tile (full C, or a multiple of 128 dividing C)
    that fits the generation-aware VMEM budget; prefer tiles giving >=2 (ideally
    an even number of) grid steps so both v7x TensorCores get work."""
    cands = sorted({C} | {m for m in range(128, C, 128) if C % m == 0}, reverse=True)
    budget = int(vmem_cap * 0.55)          # stays well under ~40 MiB on v7x's 64 MiB
    ok = [tc for tc in cands if _block_bytes(tc, H, W, Ho, Wo, Wp, dtype) <= budget]
    if not ok:
        ok = [cands[-1]]

    def steps(tc):
        return N * (C // tc)

    for tc in ok:                          # descending: biggest fitting tile first
        if steps(tc) >= 2 and steps(tc) % 2 == 0:
            return tc
    for tc in ok:
        if steps(tc) >= 2:
            return tc
    return ok[0]


def _maxpool_same_nhwc_kernel(x_ref, o_ref, rs_ref, *,
                              H, W, Ho, Wo, kh, kw, sh, sw, top, left, pad_w):
    """One (batch, channel-tile) grid step of max-pool with static 'same' padding.

    x_ref : (1, H,  W,  TC)  NHWC input tile (channels on the 128-lane axis)
    o_ref : (1, Ho, Wo, TC)  NHWC output tile
    rs_ref: (1, Wp, TC)      row scratch, Wp = W + left + right; W-pad columns = 0
    """
    TC = x_ref.shape[-1]
    Wp = rs_ref.shape[1]
    dt = x_ref.dtype

    # F.pad pads with zeros and the zeros participate in the max.  Keep the
    # scratch's W-pad columns at zero with one full-width unmasked memset per
    # grid step (per-core safe: no pl.when(program_id == 0) gating).
    if pad_w:
        rs_ref[...] = jnp.zeros((1, Wp, TC), dt)

    # One output row at a time: the largest live value is (W, TC), which stays
    # in-register even for C=384, W=64 tiles (no spills on the vst slot).
    for oh in range(Ho):
        # ---- H direction: kh taps, stride sh, zero padding at top/bottom ----
        rows = [oh * sh - top + dy for dy in range(kh)]
        rows = [r for r in rows if 0 <= r < H]
        m = x_ref[0, rows[0], :, :]
        for r in rows[1:]:
            m = jnp.maximum(m, x_ref[0, r, :, :])
        if len(rows) < kh:               # window overlaps the zero H-pad
            m = jnp.maximum(m, 0)
        rs_ref[0, left:left + W, :] = m

        # ---- W direction: kw taps, stride sw, via strided sublane reads -----
        c = rs_ref[:, pl.ds(0, Wo, stride=sw), :]
        for dx in range(1, kw):
            c = jnp.maximum(c, rs_ref[:, pl.ds(dx, Wo, stride=sw), :])
        o_ref[0, oh:oh + 1, :, :] = c.astype(o_ref.dtype)


def maxpool2d_static_same_padding(x, kernel_size=3, stride=2):
    """x: (N, C, H, W).  Equivalent to MaxPool2dStaticSamePadding(kernel, stride)(x)."""
    kh, kw = _as_pair(kernel_size)
    sh, sw = _as_pair(stride)
    N, C, H, W = x.shape

    Ho = -(-H // sh)                      # ceil(H / sh)
    Wo = -(-W // sw)                      # ceil(W / sw)
    extra_v = (Ho - 1) * sh - H + kh      # total pad along H
    extra_h = (Wo - 1) * sw - W + kw      # total pad along W
    assert extra_v >= 0 and extra_h >= 0, "negative 'same' padding not supported"
    top = extra_v // 2
    left = extra_h // 2
    Wp = W + extra_h                      # = (Wo - 1) * sw + kw

    # Lane-dense layout: channels on the 128-lane axis, W on sublanes.
    x_nhwc = jnp.transpose(x, (0, 2, 3, 1))

    vmem_cap = _vmem_capacity_bytes()
    TC = _pick_channel_tile(N, C, H, W, Ho, Wo, Wp, x.dtype, vmem_cap)
    grid = (N, C // TC)

    need = _block_bytes(TC, H, W, Ho, Wo, Wp, x.dtype)
    vmem_limit = int(min(vmem_cap * 0.7, max(2 * need, 16 << 20)))

    kernel = partial(_maxpool_same_nhwc_kernel,
                     H=H, W=W, Ho=Ho, Wo=Wo, kh=kh, kw=kw, sh=sh, sw=sw,
                     top=top, left=left, pad_w=extra_h > 0)

    flops = N * C * Ho * Wo * kh * kw               # compare/select ops
    bytes_accessed = (N * C * H * W + N * C * Ho * Wo) * x.dtype.itemsize
    cost = pl.CostEstimate(flops=int(flops), transcendentals=0,
                           bytes_accessed=int(bytes_accessed))

    out_nhwc = pl.pallas_call(
        kernel,
        out_shape=jax.ShapeDtypeStruct((N, Ho, Wo, C), x.dtype),
        grid=grid,
        in_specs=[pl.BlockSpec((1, H, W, TC), lambda n, c: (n, 0, 0, c))],
        out_specs=pl.BlockSpec((1, Ho, Wo, TC), lambda n, c: (n, 0, 0, c)),
        scratch_shapes=[pltpu.VMEM((1, Wp, TC), x.dtype)],
        compiler_params=pltpu.CompilerParams(
            dimension_semantics=("parallel", "parallel"),
            vmem_limit_bytes=vmem_limit),
        cost_estimate=cost,
    )(x_nhwc)

    return jnp.transpose(out_nhwc, (0, 3, 1, 2))


def _reference(x, kernel_size=3, stride=2):
    """Pure-JAX reference: F.pad(zeros) followed by MaxPool2d, as in the module."""
    kh, kw = _as_pair(kernel_size)
    sh, sw = _as_pair(stride)
    N, C, H, W = x.shape
    extra_h = (math.ceil(W / sw) - 1) * sw - W + kw
    extra_v = (math.ceil(H / sh) - 1) * sh - H + kh
    left = extra_h // 2
    right = extra_h - left
    top = extra_v // 2
    bottom = extra_v - top
    xp = jnp.pad(x, ((0, 0), (0, 0), (top, bottom), (left, right)))
    return lax.reduce_window(xp, -jnp.inf, lax.max,
                             (1, 1, kh, kw), (1, 1, sh, sw), "VALID")


if __name__ == "__main__":
    key = jax.random.PRNGKey(0)
    N, C, H, W = 2, 4, 16, 16          # small NCHW input; BiFPN uses kernel=3, stride=2
    x = jax.random.normal(key, (N, C, H, W), jnp.float32)

    y = maxpool2d_static_same_padding(x, kernel_size=3, stride=2)
    y = jax.block_until_ready(y)
    y_ref = _reference(x, kernel_size=3, stride=2)
    assert y.shape == (N, C, 8, 8)
    np.testing.assert_allclose(np.asarray(y), np.asarray(y_ref), rtol=0, atol=0)

    # Also exercise the odd-size path (top/left pad = 1, single grid step).
    x2 = jax.random.normal(jax.random.PRNGKey(0), (1, 4, 15, 15), jnp.float32)
    y2 = jax.block_until_ready(maxpool2d_static_same_padding(x2, 3, 2))
    np.testing.assert_allclose(np.asarray(y2), np.asarray(_reference(x2, 3, 2)),
                               rtol=0, atol=0)

    print("KERNEL_OK")
</pallas_src>

<mosaic_0001>
module attributes {stable_mosaic.version = 11 : i64} {
  func.func @_maxpool_same_nhwc_kernel(%arg0: i32, %arg1: i32, %arg2: memref<1x16x16x4xf32, #tpu.memory_space<vmem>>, %arg3: memref<1x8x8x4xf32, #tpu.memory_space<vmem>>, %arg4: memref<1x17x4xf32, #tpu.memory_space<vmem>>) attributes {dimension_semantics = [#tpu.dimension_semantics<parallel>, #tpu.dimension_semantics<parallel>], iteration_bounds = array<i64: 2, 1>, scalar_prefetch = 0 : i64, scratch_operands = 1 : i64, tpu.core_type = #tpu.core_type<tc>, window_params = [{transform_indices = @transform_0, window_bounds = array<i64: 1, 16, 16, 4>}, {transform_indices = @transform_1, window_bounds = array<i64: 1, 8, 8, 4>}]} {
    %cst = arith.constant 0.000000e+00 : f32
    %0 = vector.broadcast %cst : f32 to vector<1x17x4xf32>
    %c0 = arith.constant 0 : index
    %c0_0 = arith.constant 0 : index
    %c0_1 = arith.constant 0 : index
    %1 = vector.load %arg4[%c0, %c0_0, %c0_1] : memref<1x17x4xf32, #tpu.memory_space<vmem>>, vector<1x17x4xf32>
    tpu.vector_store %arg4[%c0, %c0_0, %c0_1], %0 {strides = array<i32>} : memref<1x17x4xf32, #tpu.memory_space<vmem>>, vector<1x17x4xf32>,
    %c0_2 = arith.constant 0 : index
    %c0_3 = arith.constant 0 : index
    %c0_4 = arith.constant 0 : index
    %c0_5 = arith.constant 0 : index
    %2 = vector.load %arg2[%c0_2, %c0_3, %c0_4, %c0_5] : memref<1x16x16x4xf32, #tpu.memory_space<vmem>>, vector<1x1x16x4xf32>
    %3 = vector.shape_cast %2 : vector<1x1x16x4xf32> to vector<16x4xf32>
    %c0_6 = arith.constant 0 : index
    %c1 = arith.constant 1 : index
    %c0_7 = arith.constant 0 : index
    %c0_8 = arith.constant 0 : index
    %4 = vector.load %arg2[%c0_6, %c1, %c0_7, %c0_8] : memref<1x16x16x4xf32, #tpu.memory_space<vmem>>, vector<1x1x16x4xf32>
    %5 = vector.shape_cast %4 : vector<1x1x16x4xf32> to vector<16x4xf32>
    %6 = arith.maximumf %3, %5 : vector<16x4xf32>
    %c0_9 = arith.constant 0 : index
    %c2 = arith.constant 2 : index
    %c0_10 = arith.constant 0 : index
    %c0_11 = arith.constant 0 : index
    %7 = vector.load %arg2[%c0_9, %c2, %c0_10, %c0_11] : memref<1x16x16x4xf32, #tpu.memory_space<vmem>>, vector<1x1x16x4xf32>
    %8 = vector.shape_cast %7 : vector<1x1x16x4xf32> to vector<16x4xf32>
    %9 = arith.maximumf %6, %8 : vector<16x4xf32>
    %c0_12 = arith.constant 0 : index
    %c0_13 = arith.constant 0 : index
    %c0_14 = arith.constant 0 : index
    %10 = vector.load %arg4[%c0_12, %c0_13, %c0_14] : memref<1x17x4xf32, #tpu.memory_space<vmem>>, vector<1x16x4xf32>
    %11 = vector.shape_cast %10 : vector<1x16x4xf32> to vector<16x4xf32>
    %12 = vector.shape_cast %9 : vector<16x4xf32> to vector<1x16x4xf32>
    tpu.vector_store %arg4[%c0_12, %c0_13, %c0_14], %12 {strides = array<i32>} : memref<1x17x4xf32, #tpu.memory_space<vmem>>, vector<1x16x4xf32>,
    %c0_15 = arith.constant 0 : index
    %c0_16 = arith.constant 0 : index
    %c0_17 = arith.constant 0 : index
    %13 = tpu.strided_load %arg4[%c0_15, %c0_16, %c0_17] {strides = array<i32: 1, 2, 1>} : memref<1x17x4xf32, #tpu.memory_space<vmem>>, vector<1x8x4xf32>
    %c0_18 = arith.constant 0 : index
    %c1_19 = arith.constant 1 : index
    %c0_20 = arith.constant 0 : index
    %14 = tpu.strided_load %arg4[%c0_18, %c1_19, %c0_20] {strides = array<i32: 1, 2, 1>} : memref<1x17x4xf32, #tpu.memory_space<vmem>>, vector<1x8x4xf32>
    %15 = arith.maximumf %13, %14 : vector<1x8x4xf32>
    %c0_21 = arith.constant 0 : index
    %c2_22 = arith.constant 2 : index
    %c0_23 = arith.constant 0 : index
    %16 = tpu.strided_load %arg4[%c0_21, %c2_22, %c0_23] {strides = array<i32: 1, 2, 1>} : memref<1x17x4xf32, #tpu.memory_space<vmem>>, vector<1x8x4xf32>
    %17 = arith.maximumf %15, %16 : vector<1x8x4xf32>
    %c0_24 = arith.constant 0 : index
    %c0_25 = arith.constant 0 : index
    %c0_26 = arith.constant 0 : index
    %c0_27 = arith.constant 0 : index
    %18 = vector.load %arg3[%c0_24, %c0_25, %c0_26, %c0_27] : memref<1x8x8x4xf32, #tpu.memory_space<vmem>>, vector<1x1x8x4xf32>
    %19 = vector.shape_cast %18 : vector<1x1x8x4xf32> to vector<1x8x4xf32>
    %20 = vector.shape_cast %17 : vector<1x8x4xf32> to vector<1x1x8x4xf32>
    tpu.vector_store %arg3[%c0_24, %c0_25, %c0_26, %c0_27], %20 {strides = array<i32>} : memref<1x8x8x4xf32, #tpu.memory_space<vmem>>, vector<1x1x8x4xf32>,
    %c0_28 = arith.constant 0 : index
    %c2_29 = arith.constant 2 : index
    %c0_30 = arith.constant 0 : index
    %c0_31 = arith.constant 0 : index
    %21 = vector.load %arg2[%c0_28, %c2_29, %c0_30, %c0_31] : memref<1x16x16x4xf32, #tpu.memory_space<vmem>>, vector<1x1x16x4xf32>
    %22 = vector.shape_cast %21 : vector<1x1x16x4xf32> to vector<16x4xf32>
    %c0_32 = arith.constant 0 : index
    %c3 = arith.constant 3 : index
    %c0_33 = arith.constant 0 : index
    %c0_34 = arith.constant 0 : index
    %23 = vector.load %arg2[%c0_32, %c3, %c0_33, %c0_34] : memref<1x16x16x4xf32, #tpu.memory_space<vmem>>, vector<1x1x16x4xf32>
    %24 = vector.shape_cast %23 : vector<1x1x16x4xf32> to vector<16x4xf32>
    %25 = arith.maximumf %22, %24 : vector<16x4xf32>
    %c0_35 = arith.constant 0 : index
    %c4 = arith.constant 4 : index
    %c0_36 = arith.constant 0 : index
    %c0_37 = arith.constant 0 : index
    %26 = vector.load %arg2[%c0_35, %c4, %c0_36, %c0_37] : memref<1x16x16x4xf32, #tpu.memory_space<vmem>>, vector<1x1x16x4xf32>
    %27 = vector.shape_cast %26 : vector<1x1x16x4xf32> to vector<16x4xf32>
    %28 = arith.maximumf %25, %27 : vector<16x4xf32>
    %c0_38 = arith.constant 0 : index
    %c0_39 = arith.constant 0 : index
    %c0_40 = arith.constant 0 : index
    %29 = vector.load %arg4[%c0_38, %c0_39, %c0_40] : memref<1x17x4xf32, #tpu.memory_space<vmem>>, vector<1x16x4xf32>
    %30 = vector.shape_cast %29 : vector<1x16x4xf32> to vector<16x4xf32>
    %31 = vector.shape_cast %28 : vector<16x4xf32> to vector<1x16x4xf32>
    tpu.vector_store %arg4[%c0_38, %c0_39, %c0_40], %31 {strides = array<i32>} : memref<1x17x4xf32, #tpu.memory_space<vmem>>, vector<1x16x4xf32>,
    %c0_41 = arith.constant 0 : index
    %c0_42 = arith.constant 0 : index
    %c0_43 = arith.constant 0 : index
    %32 = tpu.strided_load %arg4[%c0_41, %c0_42, %c0_43] {strides = array<i32: 1, 2, 1>} : memref<1x17x4xf32, #tpu.memory_space<vmem>>, vector<1x8x4xf32>
    %c0_44 = arith.constant 0 : index
    %c1_45 = arith.constant 1 : index
    %c0_46 = arith.constant 0 : index
    %33 = tpu.strided_load %arg4[%c0_44, %c1_45, %c0_46] {strides = array<i32: 1, 2, 1>} : memref<1x17x4xf32, #tpu.memory_space<vmem>>, vector<1x8x4xf32>
    %34 = arith.maximumf %32, %33 : vector<1x8x4xf32>
    %c0_47 = arith.constant 0 : index
    %c2_48 = arith.constant 2 : index
    %c0_49 = arith.constant 0 : index
    %35 = tpu.strided_load %arg4[%c0_47, %c2_48, %c0_49] {strides = array<i32: 1, 2, 1>} : memref<1x17x4xf32, #tpu.memory_space<vmem>>, vector<1x8x4xf32>
    %36 = arith.maximumf %34, %35 : vector<1x8x4xf32>
    %c0_50 = arith.constant 0 : index
    %c1_51 = arith.constant 1 : index
    %c0_52 = arith.constant 0 : index
    %c0_53 = arith.constant 0 : index
    %37 = vector.load %arg3[%c0_50, %c1_51, %c0_52, %c0_53] : memref<1x8x8x4xf32, #tpu.memory_space<vmem>>, vector<1x1x8x4xf32>
    %38 = vector.shape_cast %37 : vector<1x1x8x4xf32> to vector<1x8x4xf32>
    %39 = vector.shape_cast %36 : vector<1x8x4xf32> to vector<1x1x8x4xf32>
    tpu.vector_store %arg3[%c0_50, %c1_51, %c0_52, %c0_53], %39 {strides = array<i32>} : memref<1x8x8x4xf32, #tpu.memory_space<vmem>>, vector<1x1x8x4xf32>,
    %c0_54 = arith.constant 0 : index
    %c4_55 = arith.constant 4 : index
    %c0_56 = arith.constant 0 : index
    %c0_57 = arith.constant 0 : index
    %40 = vector.load %arg2[%c0_54, %c4_55, %c0_56, %c0_57] : memref<1x16x16x4xf32, #tpu.memory_space<vmem>>, vector<1x1x16x4xf32>
    %41 = vector.shape_cast %40 : vector<1x1x16x4xf32> to vector<16x4xf32>
    %c0_58 = arith.constant 0 : index
    %c5 = arith.constant 5 : index
    %c0_59 = arith.constant 0 : index
    %c0_60 = arith.constant 0 : index
    %42 = vector.load %arg2[%c0_58, %c5, %c0_59, %c0_60] : memref<1x16x16x4xf32, #tpu.memory_space<vmem>>, vector<1x1x16x4xf32>
    %43 = vector.shape_cast %42 : vector<1x1x16x4xf32> to vector<16x4xf32>
    %44 = arith.maximumf %41, %43 : vector<16x4xf32>
    %c0_61 = arith.constant 0 : index
    %c6 = arith.constant 6 : index
    %c0_62 = arith.constant 0 : index
    %c0_63 = arith.constant 0 : index
    %45 = vector.load %arg2[%c0_61, %c6, %c0_62, %c0_63] : memref<1x16x16x4xf32, #tpu.memory_space<vmem>>, vector<1x1x16x4xf32>
    %46 = vector.shape_cast %45 : vector<1x1x16x4xf32> to vector<16x4xf32>
    %47 = arith.maximumf %44, %46 : vector<16x4xf32>
    %c0_64 = arith.constant 0 : index
    %c0_65 = arith.constant 0 : index
    %c0_66 = arith.constant 0 : index
    %48 = vector.load %arg4[%c0_64, %c0_65, %c0_66] : memref<1x17x4xf32, #tpu.memory_space<vmem>>, vector<1x16x4xf32>
    %49 = vector.shape_cast %48 : vector<1x16x4xf32> to vector<16x4xf32>
    %50 = vector.shape_cast %47 : vector<16x4xf32> to vector<1x16x4xf32>
    tpu.vector_store %arg4[%c0_64, %c0_65, %c0_66], %50 {strides = array<i32>} : memref<1x17x4xf32, #tpu.memory_space<vmem>>, vector<1x16x4xf32>,
    %c0_67 = arith.constant 0 : index
    %c0_68 = arith.constant 0 : index
    %c0_69 = arith.constant 0 : index
    %51 = tpu.strided_load %arg4[%c0_67, %c0_68, %c0_69] {strides = array<i32: 1, 2, 1>} : memref<1x17x4xf32, #tpu.memory_space<vmem>>, vector<1x8x4xf32>
    %c0_70 = arith.constant 0 : index
    %c1_71 = arith.constant 1 : index
    %c0_72 = arith.constant 0 : index
    %52 = tpu.strided_load %arg4[%c0_70, %c1_71, %c0_72] {strides = array<i32: 1, 2, 1>} : memref<1x17x4xf32, #tpu.memory_space<vmem>>, vector<1x8x4xf32>
    %53 = arith.maximumf %51, %52 : vector<1x8x4xf32>
    %c0_73 = arith.constant 0 : index
    %c2_74 = arith.constant 2 : index
    %c0_75 = arith.constant 0 : index
    %54 = tpu.strided_load %arg4[%c0_73, %c2_74, %c0_75] {strides = array<i32: 1, 2, 1>} : memref<1x17x4xf32, #tpu.memory_space<vmem>>, vector<1x8x4xf32>
    %55 = arith.maximumf %53, %54 : vector<1x8x4xf32>
    %c0_76 = arith.constant 0 : index
    %c2_77 = arith.constant 2 : index
    %c0_78 = arith.constant 0 : index
    %c0_79 = arith.constant 0 : index
    %56 = vector.load %arg3[%c0_76, %c2_77, %c0_78, %c0_79] : memref<1x8x8x4xf32, #tpu.memory_space<vmem>>, vector<1x1x8x4xf32>
    %57 = vector.shape_cast %56 : vector<1x1x8x4xf32> to vector<1x8x4xf32>
    %58 = vector.shape_cast %55 : vector<1x8x4xf32> to vector<1x1x8x4xf32>
    tpu.vector_store %arg3[%c0_76, %c2_77, %c0_78, %c0_79], %58 {strides = array<i32>} : memref<1x8x8x4xf32, #tpu.memory_space<vmem>>, vector<1x1x8x4xf32>,
    %c0_80 = arith.constant 0 : index
    %c6_81 = arith.constant 6 : index
    %c0_82 = arith.constant 0 : index
    %c0_83 = arith.constant 0 : index
    %59 = vector.load %arg2[%c0_80, %c6_81, %c0_82, %c0_83] : memref<1x16x16x4xf32, #tpu.memory_space<vmem>>, vector<1x1x16x4xf32>
    %60 = vector.shape_cast %59 : vector<1x1x16x4xf32> to vector<16x4xf32>
    %c0_84 = arith.constant 0 : index
    %c7 = arith.constant 7 : index
    %c0_85 = arith.constant 0 : index
    %c0_86 = arith.constant 0 : index
    %61 = vector.load %arg2[%c0_84, %c7, %c0_85, %c0_86] : memref<1x16x16x4xf32, #tpu.memory_space<vmem>>, vector<1x1x16x4xf32>
    %62 = vector.shape_cast %61 : vector<1x1x16x4xf32> to vector<16x4xf32>
    %63 = arith.maximumf %60, %62 : vector<16x4xf32>
    %c0_87 = arith.constant 0 : index
    %c8 = arith.constant 8 : index
    %c0_88 = arith.constant 0 : index
    %c0_89 = arith.constant 0 : index
    %64 = vector.load %arg2[%c0_87, %c8, %c0_88, %c0_89] : memref<1x16x16x4xf32, #tpu.memory_space<vmem>>, vector<1x1x16x4xf32>
    %65 = vector.shape_cast %64 : vector<1x1x16x4xf32> to vector<16x4xf32>
    %66 = arith.maximumf %63, %65 : vector<16x4xf32>
    %c0_90 = arith.constant 0 : index
    %c0_91 = arith.constant 0 : index
    %c0_92 = arith.constant 0 : index
    %67 = vector.load %arg4[%c0_90, %c0_91, %c0_92] : memref<1x17x4xf32, #tpu.memory_space<vmem>>, vector<1x16x4xf32>
    %68 = vector.shape_cast %67 : vector<1x16x4xf32> to vector<16x4xf32>
    %69 = vector.shape_cast %66 : vector<16x4xf32> to vector<1x16x4xf32>
    tpu.vector_store %arg4[%c0_90, %c0_91, %c0_92], %69 {strides = array<i32>} : memref<1x17x4xf32, #tpu.memory_space<vmem>>, vector<1x16x4xf32>,
    %c0_93 = arith.constant 0 : index
    %c0_94 = arith.constant 0 : index
    %c0_95 = arith.constant 0 : index
    %70 = tpu.strided_load %arg4[%c0_93, %c0_94, %c0_95] {strides = array<i32: 1, 2, 1>} : memref<1x17x4xf32, #tpu.memory_space<vmem>>, vector<1x8x4xf32>
    %c0_96 = arith.constant 0 : index
    %c1_97 = arith.constant 1 : index
    %c0_98 = arith.constant 0 : index
    %71 = tpu.strided_load %arg4[%c0_96, %c1_97, %c0_98] {strides = array<i32: 1, 2, 1>} : memref<1x17x4xf32, #tpu.memory_space<vmem>>, vector<1x8x4xf32>
    %72 = arith.maximumf %70, %71 : vector<1x8x4xf32>
    %c0_99 = arith.constant 0 : index
    %c2_100 = arith.constant 2 : index
    %c0_101 = arith.constant 0 : index
    %73 = tpu.strided_load %arg4[%c0_99, %c2_100, %c0_101] {strides = array<i32: 1, 2, 1>} : memref<1x17x4xf32, #tpu.memory_space<vmem>>, vector<1x8x4xf32>
    %74 = arith.maximumf %72, %73 : vector<1x8x4xf32>
    %c0_102 = arith.constant 0 : index
    %c3_103 = arith.constant 3 : index
    %c0_104 = arith.constant 0 : index
    %c0_105 = arith.constant 0 : index
    %75 = vector.load %arg3[%c0_102, %c3_103, %c0_104, %c0_105] : memref<1x8x8x4xf32, #tpu.memory_space<vmem>>, vector<1x1x8x4xf32>
    %76 = vector.shape_cast %75 : vector<1x1x8x4xf32> to vector<1x8x4xf32>
    %77 = vector.shape_cast %74 : vector<1x8x4xf32> to vector<1x1x8x4xf32>
    tpu.vector_store %arg3[%c0_102, %c3_103, %c0_104, %c0_105], %77 {strides = array<i32>} : memref<1x8x8x4xf32, #tpu.memory_space<vmem>>, vector<1x1x8x4xf32>,
    %c0_106 = arith.constant 0 : index
    %c8_107 = arith.constant 8 : index
    %c0_108 = arith.constant 0 : index
    %c0_109 = arith.constant 0 : index
    %78 = vector.load %arg2[%c0_106, %c8_107, %c0_108, %c0_109] : memref<1x16x16x4xf32, #tpu.memory_space<vmem>>, vector<1x1x16x4xf32>
    %79 = vector.shape_cast %78 : vector<1x1x16x4xf32> to vector<16x4xf32>
    %c0_110 = arith.constant 0 : index
    %c9 = arith.constant 9 : index
    %c0_111 = arith.constant 0 : index
    %c0_112 = arith.constant 0 : index
    %80 = vector.load %arg2[%c0_110, %c9, %c0_111, %c0_112] : memref<1x16x16x4xf32, #tpu.memory_space<vmem>>, vector<1x1x16x4xf32>
    %81 = vector.shape_cast %80 : vector<1x1x16x4xf32> to vector<16x4xf32>
    %82 = arith.maximumf %79, %81 : vector<16x4xf32>
    %c0_113 = arith.constant 0 : index
    %c10 = arith.constant 10 : index
    %c0_114 = arith.constant 0 : index
    %c0_115 = arith.constant 0 : index
    %83 = vector.load %arg2[%c0_113, %c10, %c0_114, %c0_115] : memref<1x16x16x4xf32, #tpu.memory_space<vmem>>, vector<1x1x16x4xf32>
    %84 = vector.shape_cast %83 : vector<1x1x16x4xf32> to vector<16x4xf32>
    %85 = arith.maximumf %82, %84 : vector<16x4xf32>
    %c0_116 = arith.constant 0 : index
    %c0_117 = arith.constant 0 : index
    %c0_118 = arith.constant 0 : index
    %86 = vector.load %arg4[%c0_116, %c0_117, %c0_118] : memref<1x17x4xf32, #tpu.memory_space<vmem>>, vector<1x16x4xf32>
    %87 = vector.shape_cast %86 : vector<1x16x4xf32> to vector<16x4xf32>
    %88 = vector.shape_cast %85 : vector<16x4xf32> to vector<1x16x4xf32>
    tpu.vector_store %arg4[%c0_116, %c0_117, %c0_118], %88 {strides = array<i32>} : memref<1x17x4xf32, #tpu.memory_space<vmem>>, vector<1x16x4xf32>,
    %c0_119 = arith.constant 0 : index
    %c0_120 = arith.constant 0 : index
    %c0_121 = arith.constant 0 : index
    %89 = tpu.strided_load %arg4[%c0_119, %c0_120, %c0_121] {strides = array<i32: 1, 2, 1>} : memref<1x17x4xf32, #tpu.memory_space<vmem>>, vector<1x8x4xf32>
    %c0_122 = arith.constant 0 : index
    %c1_123 = arith.constant 1 : index
    %c0_124 = arith.constant 0 : index
    %90 = tpu.strided_load %arg4[%c0_122, %c1_123, %c0_124] {strides = array<i32: 1, 2, 1>} : memref<1x17x4xf32, #tpu.memory_space<vmem>>, vector<1x8x4xf32>
    %91 = arith.maximumf %89, %90 : vector<1x8x4xf32>
    %c0_125 = arith.constant 0 : index
    %c2_126 = arith.constant 2 : index
    %c0_127 = arith.constant 0 : index
    %92 = tpu.strided_load %arg4[%c0_125, %c2_126, %c0_127] {strides = array<i32: 1, 2, 1>} : memref<1x17x4xf32, #tpu.memory_space<vmem>>, vector<1x8x4xf32>
    %93 = arith.maximumf %91, %92 : vector<1x8x4xf32>
    %c0_128 = arith.constant 0 : index
    %c4_129 = arith.constant 4 : index
    %c0_130 = arith.constant 0 : index
    %c0_131 = arith.constant 0 : index
    %94 = vector.load %arg3[%c0_128, %c4_129, %c0_130, %c0_131] : memref<1x8x8x4xf32, #tpu.memory_space<vmem>>, vector<1x1x8x4xf32>
    %95 = vector.shape_cast %94 : vector<1x1x8x4xf32> to vector<1x8x4xf32>
    %96 = vector.shape_cast %93 : vector<1x8x4xf32> to vector<1x1x8x4xf32>
    tpu.vector_store %arg3[%c0_128, %c4_129, %c0_130, %c0_131], %96 {strides = array<i32>} : memref<1x8x8x4xf32, #tpu.memory_space<vmem>>, vector<1x1x8x4xf32>,
    %c0_132 = arith.constant 0 : index
    %c10_133 = arith.constant 10 : index
    %c0_134 = arith.constant 0 : index
    %c0_135 = arith.constant 0 : index
    %97 = vector.load %arg2[%c0_132, %c10_133, %c0_134, %c0_135] : memref<1x16x16x4xf32, #tpu.memory_space<vmem>>, vector<1x1x16x4xf32>
    %98 = vector.shape_cast %97 : vector<1x1x16x4xf32> to vector<16x4xf32>
    %c0_136 = arith.constant 0 : index
    %c11 = arith.constant 11 : index
    %c0_137 = arith.constant 0 : index
    %c0_138 = arith.constant 0 : index
    %99 = vector.load %arg2[%c0_136, %c11, %c0_137, %c0_138] : memref<1x16x16x4xf32, #tpu.memory_space<vmem>>, vector<1x1x16x4xf32>
    %100 = vector.shape_cast %99 : vector<1x1x16x4xf32> to vector<16x4xf32>
    %101 = arith.maximumf %98, %100 : vector<16x4xf32>
    %c0_139 = arith.constant 0 : index
    %c12 = arith.constant 12 : index
    %c0_140 = arith.constant 0 : index
    %c0_141 = arith.constant 0 : index
    %102 = vector.load %arg2[%c0_139, %c12, %c0_140, %c0_141] : memref<1x16x16x4xf32, #tpu.memory_space<vmem>>, vector<1x1x16x4xf32>
    %103 = vector.shape_cast %102 : vector<1x1x16x4xf32> to vector<16x4xf32>
    %104 = arith.maximumf %101, %103 : vector<16x4xf32>
    %c0_142 = arith.constant 0 : index
    %c0_143 = arith.constant 0 : index
    %c0_144 = arith.constant 0 : index
    %105 = vector.load %arg4[%c0_142, %c0_143, %c0_144] : memref<1x17x4xf32, #tpu.memory_space<vmem>>, vector<1x16x4xf32>
    %106 = vector.shape_cast %105 : vector<1x16x4xf32> to vector<16x4xf32>
    %107 = vector.shape_cast %104 : vector<16x4xf32> to vector<1x16x4xf32>
    tpu.vector_store %arg4[%c0_142, %c0_143, %c0_144], %107 {strides = array<i32>} : memref<1x17x4xf32, #tpu.memory_space<vmem>>, vector<1x16x4xf32>,
    %c0_145 = arith.constant 0 : index
    %c0_146 = arith.constant 0 : index
    %c0_147 = arith.constant 0 : index
    %108 = tpu.strided_load %arg4[%c0_145, %c0_146, %c0_147] {strides = array<i32: 1, 2, 1>} : memref<1x17x4xf32, #tpu.memory_space<vmem>>, vector<1x8x4xf32>
    %c0_148 = arith.constant 0 : index
    %c1_149 = arith.constant 1 : index
    %c0_150 = arith.constant 0 : index
    %109 = tpu.strided_load %arg4[%c0_148, %c1_149, %c0_150] {strides = array<i32: 1, 2, 1>} : memref<1x17x4xf32, #tpu.memory_space<vmem>>, vector<1x8x4xf32>
    %110 = arith.maximumf %108, %109 : vector<1x8x4xf32>
    %c0_151 = arith.constant 0 : index
    %c2_152 = arith.constant 2 : index
    %c0_153 = arith.constant 0 : index
    %111 = tpu.strided_load %arg4[%c0_151, %c2_152, %c0_153] {strides = array<i32: 1, 2, 1>} : memref<1x17x4xf32, #tpu.memory_space<vmem>>, vector<1x8x4xf32>
    %112 = arith.maximumf %110, %111 : vector<1x8x4xf32>
    %c0_154 = arith.constant 0 : index
    %c5_155 = arith.constant 5 : index
    %c0_156 = arith.constant 0 : index
    %c0_157 = arith.constant 0 : index
    %113 = vector.load %arg3[%c0_154, %c5_155, %c0_156, %c0_157] : memref<1x8x8x4xf32, #tpu.memory_space<vmem>>, vector<1x1x8x4xf32>
    %114 = vector.shape_cast %113 : vector<1x1x8x4xf32> to vector<1x8x4xf32>
    %115 = vector.shape_cast %112 : vector<1x8x4xf32> to vector<1x1x8x4xf32>
    tpu.vector_store %arg3[%c0_154, %c5_155, %c0_156, %c0_157], %115 {strides = array<i32>} : memref<1x8x8x4xf32, #tpu.memory_space<vmem>>, vector<1x1x8x4xf32>,
    %c0_158 = arith.constant 0 : index
    %c12_159 = arith.constant 12 : index
    %c0_160 = arith.constant 0 : index
    %c0_161 = arith.constant 0 : index
    %116 = vector.load %arg2[%c0_158, %c12_159, %c0_160, %c0_161] : memref<1x16x16x4xf32, #tpu.memory_space<vmem>>, vector<1x1x16x4xf32>
    %117 = vector.shape_cast %116 : vector<1x1x16x4xf32> to vector<16x4xf32>
    %c0_162 = arith.constant 0 : index
    %c13 = arith.constant 13 : index
    %c0_163 = arith.constant 0 : index
    %c0_164 = arith.constant 0 : index
    %118 = vector.load %arg2[%c0_162, %c13, %c0_163, %c0_164] : memref<1x16x16x4xf32, #tpu.memory_space<vmem>>, vector<1x1x16x4xf32>
    %119 = vector.shape_cast %118 : vector<1x1x16x4xf32> to vector<16x4xf32>
    %120 = arith.maximumf %117, %119 : vector<16x4xf32>
    %c0_165 = arith.constant 0 : index
    %c14 = arith.constant 14 : index
    %c0_166 = arith.constant 0 : index
    %c0_167 = arith.constant 0 : index
    %121 = vector.load %arg2[%c0_165, %c14, %c0_166, %c0_167] : memref<1x16x16x4xf32, #tpu.memory_space<vmem>>, vector<1x1x16x4xf32>
    %122 = vector.shape_cast %121 : vector<1x1x16x4xf32> to vector<16x4xf32>
    %123 = arith.maximumf %120, %122 : vector<16x4xf32>
    %c0_168 = arith.constant 0 : index
    %c0_169 = arith.constant 0 : index
    %c0_170 = arith.constant 0 : index
    %124 = vector.load %arg4[%c0_168, %c0_169, %c0_170] : memref<1x17x4xf32, #tpu.memory_space<vmem>>, vector<1x16x4xf32>
    %125 = vector.shape_cast %124 : vector<1x16x4xf32> to vector<16x4xf32>
    %126 = vector.shape_cast %123 : vector<16x4xf32> to vector<1x16x4xf32>
    tpu.vector_store %arg4[%c0_168, %c0_169, %c0_170], %126 {strides = array<i32>} : memref<1x17x4xf32, #tpu.memory_space<vmem>>, vector<1x16x4xf32>,
    %c0_171 = arith.constant 0 : index
    %c0_172 = arith.constant 0 : index
    %c0_173 = arith.constant 0 : index
    %127 = tpu.strided_load %arg4[%c0_171, %c0_172, %c0_173] {strides = array<i32: 1, 2, 1>} : memref<1x17x4xf32, #tpu.memory_space<vmem>>, vector<1x8x4xf32>
    %c0_174 = arith.constant 0 : index
    %c1_175 = arith.constant 1 : index
    %c0_176 = arith.constant 0 : index
    %128 = tpu.strided_load %arg4[%c0_174, %c1_175, %c0_176] {strides = array<i32: 1, 2, 1>} : memref<1x17x4xf32, #tpu.memory_space<vmem>>, vector<1x8x4xf32>
    %129 = arith.maximumf %127, %128 : vector<1x8x4xf32>
    %c0_177 = arith.constant 0 : index
    %c2_178 = arith.constant 2 : index
    %c0_179 = arith.constant 0 : index
    %130 = tpu.strided_load %arg4[%c0_177, %c2_178, %c0_179] {strides = array<i32: 1, 2, 1>} : memref<1x17x4xf32, #tpu.memory_space<vmem>>, vector<1x8x4xf32>
    %131 = arith.maximumf %129, %130 : vector<1x8x4xf32>
    %c0_180 = arith.constant 0 : index
    %c6_181 = arith.constant 6 : index
    %c0_182 = arith.constant 0 : index
    %c0_183 = arith.constant 0 : index
    %132 = vector.load %arg3[%c0_180, %c6_181, %c0_182, %c0_183] : memref<1x8x8x4xf32, #tpu.memory_space<vmem>>, vector<1x1x8x4xf32>
    %133 = vector.shape_cast %132 : vector<1x1x8x4xf32> to vector<1x8x4xf32>
    %134 = vector.shape_cast %131 : vector<1x8x4xf32> to vector<1x1x8x4xf32>
    tpu.vector_store %arg3[%c0_180, %c6_181, %c0_182, %c0_183], %134 {strides = array<i32>} : memref<1x8x8x4xf32, #tpu.memory_space<vmem>>, vector<1x1x8x4xf32>,
    %c0_184 = arith.constant 0 : index
    %c14_185 = arith.constant 14 : index
    %c0_186 = arith.constant 0 : index
    %c0_187 = arith.constant 0 : index
    %135 = vector.load %arg2[%c0_184, %c14_185, %c0_186, %c0_187] : memref<1x16x16x4xf32, #tpu.memory_space<vmem>>, vector<1x1x16x4xf32>
    %136 = vector.shape_cast %135 : vector<1x1x16x4xf32> to vector<16x4xf32>
    %c0_188 = arith.constant 0 : index
    %c15 = arith.constant 15 : index
    %c0_189 = arith.constant 0 : index
    %c0_190 = arith.constant 0 : index
    %137 = vector.load %arg2[%c0_188, %c15, %c0_189, %c0_190] : memref<1x16x16x4xf32, #tpu.memory_space<vmem>>, vector<1x1x16x4xf32>
    %138 = vector.shape_cast %137 : vector<1x1x16x4xf32> to vector<16x4xf32>
    %139 = arith.maximumf %136, %138 : vector<16x4xf32>
    %cst_191 = arith.constant 0.000000e+00 : f32
    %140 = vector.broadcast %cst_191 : f32 to vector<16x4xf32>
    %141 = arith.maximumf %139, %140 : vector<16x4xf32>
    %c0_192 = arith.constant 0 : index
    %c0_193 = arith.constant 0 : index
    %c0_194 = arith.constant 0 : index
    %142 = vector.load %arg4[%c0_192, %c0_193, %c0_194] : memref<1x17x4xf32, #tpu.memory_space<vmem>>, vector<1x16x4xf32>
    %143 = vector.shape_cast %142 : vector<1x16x4xf32> to vector<16x4xf32>
    %144 = vector.shape_cast %141 : vector<16x4xf32> to vector<1x16x4xf32>
    tpu.vector_store %arg4[%c0_192, %c0_193, %c0_194], %144 {strides = array<i32>} : memref<1x17x4xf32, #tpu.memory_space<vmem>>, vector<1x16x4xf32>,
    %c0_195 = arith.constant 0 : index
    %c0_196 = arith.constant 0 : index
    %c0_197 = arith.constant 0 : index
    %145 = tpu.strided_load %arg4[%c0_195, %c0_196, %c0_197] {strides = array<i32: 1, 2, 1>} : memref<1x17x4xf32, #tpu.memory_space<vmem>>, vector<1x8x4xf32>
    %c0_198 = arith.constant 0 : index
    %c1_199 = arith.constant 1 : index
    %c0_200 = arith.constant 0 : index
    %146 = tpu.strided_load %arg4[%c0_198, %c1_199, %c0_200] {strides = array<i32: 1, 2, 1>} : memref<1x17x4xf32, #tpu.memory_space<vmem>>, vector<1x8x4xf32>
    %147 = arith.maximumf %145, %146 : vector<1x8x4xf32>
    %c0_201 = arith.constant 0 : index
    %c2_202 = arith.constant 2 : index
    %c0_203 = arith.constant 0 : index
    %148 = tpu.strided_load %arg4[%c0_201, %c2_202, %c0_203] {strides = array<i32: 1, 2, 1>} : memref<1x17x4xf32, #tpu.memory_space<vmem>>, vector<1x8x4xf32>
    %149 = arith.maximumf %147, %148 : vector<1x8x4xf32>
    %c0_204 = arith.constant 0 : index
    %c7_205 = arith.constant 7 : index
    %c0_206 = arith.constant 0 : index
    %c0_207 = arith.constant 0 : index
    %150 = vector.load %arg3[%c0_204, %c7_205, %c0_206, %c0_207] : memref<1x8x8x4xf32, #tpu.memory_space<vmem>>, vector<1x1x8x4xf32>
    %151 = vector.shape_cast %150 : vector<1x1x8x4xf32> to vector<1x8x4xf32>
    %152 = vector.shape_cast %149 : vector<1x8x4xf32> to vector<1x1x8x4xf32>
    tpu.vector_store %arg3[%c0_204, %c7_205, %c0_206, %c0_207], %152 {strides = array<i32>} : memref<1x8x8x4xf32, #tpu.memory_space<vmem>>, vector<1x1x8x4xf32>,
    return
  }
  func.func @transform_0(%arg0: i32, %arg1: i32) -> (i32, i32, i32, i32) {
    %c0_i32 = arith.constant 0 : i32
    %c0_i32_0 = arith.constant 0 : i32
    %c0_i32_1 = arith.constant 0 : i32
    return %arg0, %c0_i32, %c0_i32_0, %arg1 : i32, i32, i32, i32
  }
  func.func @transform_1(%arg0: i32, %arg1: i32) -> (i32, i32, i32, i32) {
    %c0_i32 = arith.constant 0 : i32
    %c0_i32_0 = arith.constant 0 : i32
    %c0_i32_1 = arith.constant 0 : i32
    return %arg0, %c0_i32, %c0_i32_0, %arg1 : i32, i32, i32, i32
  }
}

</mosaic_0001>

<bundles_post_ra>
// kernel: tpu_custom_call.1
= control target key start
LH: loop header
LB: loop body
LE: loop exit
PB: predicated region body
PF: predicated region fallthrough
CT: control target
= control target key end

     0   :  { %s526_s6 = smov 0   ;;  %s528_s7 = smov 0   ;;  %s633_s0 = inlined_call_operand.vmem [shape: f32[2,16,16,4], index: 0, kind: input, shape index: {}]   ;;  %s634_s1 = inlined_call_operand.vmem [shape: f32[2,8,8,4], index: 1, kind: output, shape index: {}]  }
   0x1   :  { %s530_s8 = smov 0  }
   0x2 LB: > { %s23_s9 = sadd.s32 1, %s509_s7  ;;  %p406_p0 = scmp.ge.s32.totalorder %s513_s8, 1  ;;  %s513_s8 = sphi %s530_s8, %s11_s8   ;;  %s509_s7 = sphi %s528_s7, %s636_s7   ;;  %s505_s6 = sphi %s526_s6, %s635_s6  }
   0x3   : > { %p25_p1 = scmp.ge.s32.totalorder %s23_s9, 2  ;;  %p106_p2 = scmp.lt.s32.totalorder %s513_s8, 3 }
   0x5   : > { %s638_s9 = smov (%p25_p1, %s23_s9), 0  ;;  %p107_p3 = pnand %p406_p0, %p106_p2 }
   0x6   : > { %p132_p4 = scmp.lt.s32.totalorder (!%p107_p3), %s505_s6, 1 }
   0x7   : > { %110 = sbr.rel (%p107_p3) target bundleno = 97 (0x61), region = 24 }
   0xc   : > { %vm148_vm0 = vcmask 31744   ;;  %vm151_vm1 = vcmask 24576   ;;  %v515_v0 = vmov 0.0   ;;  %s640_s6 = smov (!%p132_p4, %s505_s6), 1 }
   0xd   : > { %149 = vst.msk [vmem:[#allocation2] sm:$0xff] %vm148_vm0, %v515_v0  ;;  %150 = vst.msk [vmem:[#allocation2 + $0x8] sm:$0xff] %vm148_vm0, %v515_v0  ;;  %s464_s10 = sshll.u32 %s640_s6, 8  ;;  %s465_s14 = sshll.u32 %s640_s6, 6 }
   0xe   : > { %152 = vst.msk [vmem:[#allocation2 + $0x10] sm:$0x1] %vm151_vm1, %v515_v0  ;;  %s552_s13 = scalar_lea.vmem %s633_s0, %s464_s10  ;;  %s574_s17 = scalar_lea.vmem %s634_s1, %s465_s14 }
   0xf   : > { %v153_v1 = vld [vmem:[%s552_s13] sm:$0xff]  ;;  %v411_v2 = vld [vmem:[%s552_s13 + $0x10] sm:$0xff]  ;;  %v154_v5 = vld [vmem:[%s552_s13 + $0x8] sm:$0xff] }
  0x10   : > { %v413_v3 = vld [vmem:[%s552_s13 + $0x20] sm:$0xff]  ;;  %v158_v4 = vmax.f32 %v153_v1, %v411_v2  ;;  %v412_v6 = vld [vmem:[%s552_s13 + $0x18] sm:$0xff]  ;;  %v414_v7 = vld [vmem:[%s552_s13 + $0x28] sm:$0xff] }
  0x11   : > { %v159_v8 = vmax.f32 %v154_v5, %v412_v6  ;;  %v417_v10 = vld [vmem:[%s552_s13 + $0x30] sm:$0xff]  ;;  %v418_v11 = vld [vmem:[%s552_s13 + $0x38] sm:$0xff]  ;;  %v419_v15 = vld [vmem:[%s552_s13 + $0x40] sm:$0xff] }
  0x12   : > { %v163_v9 = vmax.f32 %v158_v4, %v413_v3  ;;  %v180_v13 = vmax.f32 %v413_v3, %v417_v10  ;;  %v181_v14 = vmax.f32 %v414_v7, %v418_v11  ;;  %v420_v16 = vld [vmem:[%s552_s13 + $0x48] sm:$0xff]  ;;  %v424_v19 = vld [vmem:[%s552_s13 + $0x50] sm:$0xff]  ;;  %v425_v20 = vld [vmem:[%s552_s13 + $0x58] sm:$0xff] }
  0x13   : > { %v164_v12 = vmax.f32 %v159_v8, %v414_v7  ;;  %v201_v25 = vmax.f32 %v419_v15, %v424_v19  ;;  %v202_v26 = vmax.f32 %v420_v16, %v425_v20  ;;  %v426_v27 = vld [vmem:[%s552_s13 + $0x60] sm:$0xff]  ;;  %v427_v28 = vld [vmem:[%s552_s13 + $0x68] sm:$0xff]  ;;  %v431_v32 = vld [vmem:[%s552_s13 + $0x70] sm:$0xff] }
  0x14   : > { %165 = vst.msk [vmem:[#allocation2] sm:$0xff] %vm148_vm0, %v163_v9  ;;  %v185_v17 = vmax.f32 %v180_v13, %v419_v15  ;;  %v186_v18 = vmax.f32 %v181_v14, %v420_v16  ;;  %v432_v33 = vld [vmem:[%s552_s13 + $0x78] sm:$0xff]  ;;  %v222_v38 = vmax.f32 %v426_v27, %v431_v32  ;;  %v433_v40 = vld [vmem:[%s552_s13 + $0x80] sm:$0xff]  ;;  %v434_v41 = vld [vmem:[%s552_s13 + $0x88] sm:$0xff] }
  0x15   : > { %166 = vst.msk [vmem:[#allocation2 + $0x8] sm:$0xff] %vm148_vm0, %v164_v12  ;;  %v206_v30 = vmax.f32 %v201_v25, %v426_v27  ;;  %v207_v31 = vmax.f32 %v202_v26, %v427_v28  ;;  %v223_v39 = vmax.f32 %v427_v28, %v432_v33  ;;  %v438_v45 = vld [vmem:[%s552_s13 + $0x90] sm:$0xff]  ;;  %v439_v46 = vld [vmem:[%s552_s13 + $0x98] sm:$0xff]  ;;  %v440_v53 = vld [vmem:[%s552_s13 + $0xa0] sm:$0xff] }
  0x16   : > { %v227_v43 = vmax.f32 %v222_v38, %v433_v40  ;;  %v243_v51 = vmax.f32 %v433_v40, %v438_v45  ;;  %v244_v52 = vmax.f32 %v434_v41, %v439_v46  ;;  %v441_v54 = vld [vmem:[%s552_s13 + $0xa8] sm:$0xff]  ;;  %v445_v58 = vld [vmem:[%s552_s13 + $0xb0] sm:$0xff]  ;;  %v446_v59 = vld [vmem:[%s552_s13 + $0xb8] sm:$0xff] }
  0x17   : > { %v228_v44 = vmax.f32 %v223_v39, %v434_v41  ;;  %v264_v0 = vmax.f32 %v440_v53, %v445_v58  ;;  %v265_v1 = vmax.f32 %v441_v54, %v446_v59  ;;  %v447_v2 = vld [vmem:[%s552_s13 + $0xc0] sm:$0xff]  ;;  %v448_v3 = vld [vmem:[%s552_s13 + $0xc8] sm:$0xff]  ;;  %v452_v7 = vld [vmem:[%s552_s13 + $0xd0] sm:$0xff] }
  0x18   : > { %v248_v56 = vmax.f32 %v243_v51, %v440_v53  ;;  %v249_v57 = vmax.f32 %v244_v52, %v441_v54  ;;  %v453_v8 = vld [vmem:[%s552_s13 + $0xd8] sm:$0xff]  ;;  %v285_v13 = vmax.f32 %v447_v2, %v452_v7  ;;  %v454_v15 = vld [vmem:[%s552_s13 + $0xe0] sm:$0xff]  ;;  %v455_v16 = vld [vmem:[%s552_s13 + $0xe8] sm:$0xff] }
  0x19   : > { %v269_v5 = vmax.f32 %v264_v0, %v447_v2  ;;  %v270_v6 = vmax.f32 %v265_v1, %v448_v3  ;;  %v286_v14 = vmax.f32 %v448_v3, %v453_v8  ;;  %v459_v20 = vld [vmem:[%s552_s13 + $0xf0] sm:$0xff] }
  0x1a   : > { %v306_v26 = vmax.f32 %v454_v15, %v459_v20 }
  0x1b   : > { %v291_v19 = vmax.f32 %v286_v14, %v455_v16 }
  0x1c   : > { %v167_v21 = vld [vmem:[#allocation2] ss:$2 sm:$0xff]  ;;  %v169_v22 = vld [vmem:[#allocation2 + $0x1] ss:$2 sm:$0xff] }
  0x1d   : > { %v172_v23 = vld [vmem:[#allocation2 + $0x2] ss:$2 sm:$0xff]  ;;  %v170_v24 = vmax.f32 %v167_v21, %v169_v22  ;;  %v460_v21 = vld [vmem:[%s552_s13 + $0xf8] sm:$0xff] }
  0x1e   : > { %187 = vst.msk [vmem:[#allocation2] sm:$0xff] %vm148_vm0, %v185_v17  ;;  %188 = vst.msk [vmem:[#allocation2 + $0x8] sm:$0xff] %vm148_vm0, %v186_v18  ;;  %v290_v18 = vmax.f32 %v285_v13, %v454_v15  ;;  %v307_v27 = vmax.f32 %v455_v16, %v460_v21 }
  0x1f   : > { %v173_v29 = vmax.f32 %v170_v24, %v172_v23 }
  0x21   : > { %174 = vst.msk [vmem:[%s574_s17] sm:$0xff] %vm148_vm0, %v173_v29  ;;  %v308_v29 = vmax.f32 %v306_v26, 0.0 }
  0x25   : > { %v189_v34 = vld [vmem:[#allocation2] ss:$2 sm:$0xff]  ;;  %v190_v35 = vld [vmem:[#allocation2 + $0x1] ss:$2 sm:$0xff] }
  0x26   : > { %v192_v36 = vld [vmem:[#allocation2 + $0x2] ss:$2 sm:$0xff]  ;;  %v191_v37 = vmax.f32 %v189_v34, %v190_v35 }
  0x27   : > { %208 = vst.msk [vmem:[#allocation2] sm:$0xff] %vm148_vm0, %v206_v30  ;;  %209 = vst.msk [vmem:[#allocation2 + $0x8] sm:$0xff] %vm148_vm0, %v207_v31  ;;  %v309_v30 = vmax.f32 %v307_v27, 0.0 }
  0x28   : > { %v193_v42 = vmax.f32 %v191_v37, %v192_v36 }
  0x2a   : > { %421 = vst.msk [vmem:[%s574_s17 + $0x8] sm:$0xff] %vm148_vm0, %v193_v42 }
  0x2e   : > { %v210_v47 = vld [vmem:[#allocation2] ss:$2 sm:$0xff]  ;;  %v211_v48 = vld [vmem:[#allocation2 + $0x1] ss:$2 sm:$0xff] }
  0x2f   : > { %v213_v49 = vld [vmem:[#allocation2 + $0x2] ss:$2 sm:$0xff]  ;;  %v212_v50 = vmax.f32 %v210_v47, %v211_v48 }
  0x30   : > { %229 = vst.msk [vmem:[#allocation2] sm:$0xff] %vm148_vm0, %v227_v43  ;;  %230 = vst.msk [vmem:[#allocation2 + $0x8] sm:$0xff] %vm148_vm0, %v228_v44 }
  0x31   : > { %v214_v55 = vmax.f32 %v212_v50, %v213_v49 }
  0x33   : > { %428 = vst.msk [vmem:[%s574_s17 + $0x10] sm:$0xff] %vm148_vm0, %v214_v55 }
  0x37   : > { %v231_v60 = vld [vmem:[#allocation2] ss:$2 sm:$0xff]  ;;  %v232_v61 = vld [vmem:[#allocation2 + $0x1] ss:$2 sm:$0xff] }
  0x38   : > { %v234_v62 = vld [vmem:[#allocation2 + $0x2] ss:$2 sm:$0xff]  ;;  %v233_v63 = vmax.f32 %v231_v60, %v232_v61 }
  0x39   : > { %250 = vst.msk [vmem:[#allocation2] sm:$0xff] %vm148_vm0, %v248_v56  ;;  %251 = vst.msk [vmem:[#allocation2 + $0x8] sm:$0xff] %vm148_vm0, %v249_v57 }
  0x3a   : > { %v235_v4 = vmax.f32 %v233_v63, %v234_v62 }
  0x3c   : > { %435 = vst.msk [vmem:[%s574_s17 + $0x18] sm:$0xff] %vm148_vm0, %v235_v4 }
  0x40   : > { %v252_v9 = vld [vmem:[#allocation2] ss:$2 sm:$0xff]  ;;  %v253_v10 = vld [vmem:[#allocation2 + $0x1] ss:$2 sm:$0xff] }
  0x41   : > { %v255_v11 = vld [vmem:[#allocation2 + $0x2] ss:$2 sm:$0xff]  ;;  %v254_v12 = vmax.f32 %v252_v9, %v253_v10 }
  0x42   : > { %271 = vst.msk [vmem:[#allocation2] sm:$0xff] %vm148_vm0, %v269_v5  ;;  %272 = vst.msk [vmem:[#allocation2 + $0x8] sm:$0xff] %vm148_vm0, %v270_v6 }
  0x43   : > { %v256_v17 = vmax.f32 %v254_v12, %v255_v11 }
  0x45   : > { %442 = vst.msk [vmem:[%s574_s17 + $0x20] sm:$0xff] %vm148_vm0, %v256_v17 }
  0x49   : > { %v273_v22 = vld [vmem:[#allocation2] ss:$2 sm:$0xff]  ;;  %v274_v23 = vld [vmem:[#allocation2 + $0x1] ss:$2 sm:$0xff] }
  0x4a   : > { %v276_v24 = vld [vmem:[#allocation2 + $0x2] ss:$2 sm:$0xff]  ;;  %v275_v25 = vmax.f32 %v273_v22, %v274_v23 }
  0x4b   : > { %292 = vst.msk [vmem:[#allocation2] sm:$0xff] %vm148_vm0, %v290_v18  ;;  %293 = vst.msk [vmem:[#allocation2 + $0x8] sm:$0xff] %vm148_vm0, %v291_v19 }
  0x4c   : > { %v277_v28 = vmax.f32 %v275_v25, %v276_v24 }
  0x4e   : > { %449 = vst.msk [vmem:[%s574_s17 + $0x28] sm:$0xff] %vm148_vm0, %v277_v28 }
  0x52   : > { %v294_v31 = vld [vmem:[#allocation2] ss:$2 sm:$0xff]  ;;  %v295_v32 = vld [vmem:[#allocation2 + $0x1] ss:$2 sm:$0xff] }
  0x53   : > { %v297_v33 = vld [vmem:[#allocation2 + $0x2] ss:$2 sm:$0xff]  ;;  %v296_v34 = vmax.f32 %v294_v31, %v295_v32 }
  0x54   : > { %310 = vst.msk [vmem:[#allocation2] sm:$0xff] %vm148_vm0, %v308_v29  ;;  %311 = vst.msk [vmem:[#allocation2 + $0x8] sm:$0xff] %vm148_vm0, %v309_v30 }
  0x55   : > { %v298_v35 = vmax.f32 %v296_v34, %v297_v33 }
  0x57   : > { %456 = vst.msk [vmem:[%s574_s17 + $0x30] sm:$0xff] %vm148_vm0, %v298_v35 }
  0x5b   : > { %v312_v36 = vld [vmem:[#allocation2] ss:$2 sm:$0xff]  ;;  %v313_v37 = vld [vmem:[#allocation2 + $0x1] ss:$2 sm:$0xff] }
  0x5c   : > { %v314_v38 = vmax.f32 %v312_v36, %v313_v37  ;;  %v315_v39 = vld [vmem:[#allocation2 + $0x2] ss:$2 sm:$0xff] }
  0x5e   : > { %v316_v40 = vmax.f32 %v314_v38, %v315_v39 }
  0x60   : > { %461 = vst.msk [vmem:[%s574_s17 + $0x38] sm:$0xff] %vm148_vm0, %v316_v40 }
  0x61 PF: > { %s11_s8 = sadd.s32 1, %s513_s8   ;;  %s635_s6 = smov %s509_s7 }
  0x62   : > { %p8_p5 = scmp.ge.s32.totalorder %s11_s8, 4   ;;  %s636_s7 = smov %s638_s9 }
  0x64   :  { %10 = sbr.rel (!%p8_p5) target bundleno = 2 (0x2), region = 78 }

</bundles_post_ra>
